<compile_context>
chip_gen: v7x
topology: tpu7x:2x2x1
jax: 0.10.0
libtpu: 0.0.40
codegen_flags: <defaults>
</compile_context>

<pallas_src>
import functools

import jax
import jax.numpy as jnp
from jax.experimental import pallas as pl
from jax.experimental.pallas import tpu as pltpu

_LANE = 128      # vreg lane width
_SUBLANE = 8     # vreg sublane count


def _round_up(x, m):
    return ((x + m - 1) // m) * m


# ----------------------------------------------------------------------------
# Kernel
# ----------------------------------------------------------------------------
def actor_kernel(obs_ref, w1_ref, w2_ref, wm_ref, hb_ref, mp_ref, out_ref):
    # Fused parameter blocks:
    #   hb_ref: (8, hid_p)  row 0 = b1, row 1 = b2           (rest zero)
    #   mp_ref: (8, act_p)  row 0 = bm, row 1 = scale, row 2 = bias
    b1 = hb_ref[0:1, :]
    b2 = hb_ref[1:2, :]
    bm = mp_ref[0:1, :]
    scale = mp_ref[1:2, :]
    bias = mp_ref[2:3, :]

    # Layer 1: Linear + ReLU (MXU matmul, f32 accumulation).  K = true obs_dim.
    h1 = jnp.dot(obs_ref[...], w1_ref[...], preferred_element_type=jnp.float32)
    h1 = jnp.maximum(h1 + b1, 0.0)

    # Layer 2: Linear + ReLU
    h2 = jnp.dot(h1, w2_ref[...], preferred_element_type=jnp.float32)
    h2 = jnp.maximum(h2 + b2, 0.0)

    # Mean head + deterministic squashed action (tanh runs on the idle EUP slot)
    mean = jnp.dot(h2, wm_ref[...], preferred_element_type=jnp.float32) + bm
    out_ref[...] = (jnp.tanh(mean) * scale + bias).astype(out_ref.dtype)


# ----------------------------------------------------------------------------
# One-time (export-time) parameter preparation.  NOT on the per-call path.
# ----------------------------------------------------------------------------
def prepare_actor_params(params, lane_multiple=_LANE):
    """Pad weights to MXU-friendly shapes and fuse the tiny bias vectors.

    lane_multiple: 128 everywhere by default; use 256 on v6e/v7x if hidden_dim
    grows large enough (>=512) for the matmuls to become compute-relevant.
    Weights are [in, out] (PyTorch nn.Linear weight transposed).
    Padded rows/cols/bias lanes are exactly zero so real action lanes are
    bit-identical; the wrapper slices them off.
    """
    obs_dim, hidden = params["w1"].shape
    _, act_dim = params["wm"].shape
    hid_p = _round_up(hidden, lane_multiple)
    act_p = _round_up(act_dim, lane_multiple)

    def pad2(a, rows, cols):
        return jnp.pad(a.astype(jnp.float32),
                       ((0, rows - a.shape[0]), (0, cols - a.shape[1])))

    # W1 keeps its true K (= obs_dim): obs streams unpadded in the lane dim.
    w1 = pad2(params["w1"], obs_dim, hid_p)
    w2 = pad2(params["w2"], hid_p, hid_p)
    wm = pad2(params["wm"], hid_p, act_p)

    hb = jnp.zeros((_SUBLANE, hid_p), jnp.float32)
    hb = hb.at[0, :hidden].set(params["b1"].reshape(-1).astype(jnp.float32))
    hb = hb.at[1, :hidden].set(params["b2"].reshape(-1).astype(jnp.float32))

    mp = jnp.zeros((_SUBLANE, act_p), jnp.float32)
    mp = mp.at[0, :act_dim].set(params["bm"].reshape(-1).astype(jnp.float32))
    mp = mp.at[1, :act_dim].set(
        params["action_scale"].reshape(-1).astype(jnp.float32))
    mp = mp.at[2, :act_dim].set(
        params["action_bias"].reshape(-1).astype(jnp.float32))

    # TODO(synk): optionally store w1/w2/wm (and stream obs) in bf16 with f32
    # accumulation to halve weight/obs HBM traffic, if the exported policy
    # tolerates it.
    return {
        "w1": w1, "w2": w2, "wm": wm, "hb": hb, "mp": mp,
        "obs_dim": obs_dim, "act_dim": act_dim,
        "hid_p": hid_p, "act_p": act_p,
    }


# ----------------------------------------------------------------------------
# Forward
# ----------------------------------------------------------------------------
def actor_for_export_forward(obs, prepared, batch_tile=2048):
    """obs: [B, obs_dim] float32 -> action: [B, act_dim] float32."""
    B = obs.shape[0]
    obs_dim = prepared["obs_dim"]
    act_dim = prepared["act_dim"]
    hid_p = prepared["hid_p"]
    act_p = prepared["act_p"]
    assert obs.shape[1] == obs_dim, "obs last dim must match exported obs_dim"

    # Batch tile: large enough to amortize ~0.35 us/step grid overhead, but
    # capped at ceil(B/2) (sublane-aligned) so large batches keep >= 2 grid
    # steps and the "parallel" axis can split across both v7x TensorCores.
    tb = min(_round_up(batch_tile, _SUBLANE),
             _round_up(pl.cdiv(B, 2), _SUBLANE),
             _round_up(B, _SUBLANE))
    tb = max(tb, _SUBLANE)
    b_p = _round_up(B, tb)
    grid = (b_p // tb,)

    # Only the batch axis may be padded (cheap: obs last dim is unpadded, and
    # padded rows never mix with real rows).  No lane padding of obs.
    obs_in = obs.astype(jnp.float32)
    if b_p != B:
        obs_in = jnp.pad(obs_in, ((0, b_p - B), (0, 0)))

    flops = 2 * b_p * (obs_dim * hid_p + hid_p * hid_p + hid_p * act_p)
    bytes_accessed = 4 * (
        b_p * obs_dim + b_p * act_p
        + obs_dim * hid_p + hid_p * hid_p + hid_p * act_p
        + _SUBLANE * (hid_p + act_p))
    cost = pl.CostEstimate(flops=flops,
                           transcendentals=b_p * act_p,
                           bytes_accessed=bytes_accessed)

    def const_spec(shape):
        # Constant block index across the grid -> DMA'd once, VMEM-resident.
        return pl.BlockSpec(shape, lambda i: (0, 0))

    out = pl.pallas_call(
        actor_kernel,
        out_shape=jax.ShapeDtypeStruct((b_p, act_p), jnp.float32),
        grid=grid,
        in_specs=[
            # Streamed obs tile; last dim equals the full array dim (legal),
            # so no 32->128 lane inflation of the streamed bytes.
            pl.BlockSpec((tb, obs_dim), lambda i: (i, 0)),
            const_spec((obs_dim, hid_p)),                  # W1
            const_spec((hid_p, hid_p)),                    # W2
            const_spec((hid_p, act_p)),                    # Wm
            const_spec((_SUBLANE, hid_p)),                 # b1 / b2 block
            const_spec((_SUBLANE, act_p)),                 # bm / scale / bias block
        ],
        out_specs=pl.BlockSpec((tb, act_p), lambda i: (i, 0)),
        compiler_params=pltpu.CompilerParams(
            dimension_semantics=("parallel",)),
        cost_estimate=cost,
    )(obs_in, prepared["w1"], prepared["w2"], prepared["wm"],
      prepared["hb"], prepared["mp"])

    # Slice away batch + lane padding.  (Downstream consumers that can accept
    # the padded (b_p, act_p) buffer may skip this copy entirely.)
    return out[:B, :act_dim]


def make_actor_for_export(params, batch_tile=2048, lane_multiple=_LANE):
    """Export-time factory: pads/fuses params ONCE, returns a jitted forward."""
    prepared = prepare_actor_params(params, lane_multiple=lane_multiple)

    def fwd(obs):
        return actor_for_export_forward(obs, prepared, batch_tile=batch_tile)

    return jax.jit(fwd)


# ----------------------------------------------------------------------------
# Synthetic params / pure-JAX reference / test
# ----------------------------------------------------------------------------
def init_params(key, obs_dim, hidden_dim, act_dim):
    """Deterministic synthetic parameters (shapes match the SAC Actor __init__)."""
    k1, k2, k3, k4, k5, k6 = jax.random.split(key, 6)
    scale = 0.1
    return {
        # weights stored as [in, out] = PyTorch nn.Linear weight transposed
        "w1": scale * jax.random.normal(k1, (obs_dim, hidden_dim), jnp.float32),
        "b1": scale * jax.random.normal(k2, (1, hidden_dim), jnp.float32),
        "w2": scale * jax.random.normal(k3, (hidden_dim, hidden_dim), jnp.float32),
        "b2": scale * jax.random.normal(k4, (1, hidden_dim), jnp.float32),
        "wm": scale * jax.random.normal(k5, (hidden_dim, act_dim), jnp.float32),
        "bm": scale * jax.random.normal(k6, (1, act_dim), jnp.float32),
        # action rescaling buffers (env action space [-1, 1] by default)
        "action_scale": jnp.ones((1, act_dim), jnp.float32),
        "action_bias": jnp.zeros((1, act_dim), jnp.float32),
    }


def actor_reference(obs, params):
    """Pure-JAX reference of the deterministic SAC actor forward."""
    h1 = jnp.maximum(obs @ params["w1"] + params["b1"], 0.0)
    h2 = jnp.maximum(h1 @ params["w2"] + params["b2"], 0.0)
    mean = h2 @ params["wm"] + params["bm"]
    return jnp.tanh(mean) * params["action_scale"] + params["action_bias"]


if __name__ == "__main__":
    # Small shapes: batch=8 observations of dim 32, hidden=64, 8 actions.
    B, OBS_DIM, HIDDEN, ACT_DIM = 8, 32, 64, 8

    key = jax.random.PRNGKey(0)
    k_params, k_obs = jax.random.split(key)
    params = init_params(k_params, OBS_DIM, HIDDEN, ACT_DIM)
    obs = jax.random.normal(k_obs, (B, OBS_DIM), jnp.float32)

    # Export-time: pad/fuse once; per-call path only streams obs and actions.
    actor_fn = make_actor_for_export(params)

    action = jax.block_until_ready(actor_fn(obs))

    ref = actor_reference(obs, params)
    assert action.shape == (B, ACT_DIM)
    assert jnp.allclose(action, ref, atol=1e-5, rtol=1e-5)

    print("KERNEL_OK")
</pallas_src>

<mosaic_0001>
module attributes {stable_mosaic.version = 11 : i64} {
  func.func @actor_kernel(%arg0: i32, %arg1: memref<8x32xf32, #tpu.memory_space<vmem>>, %arg2: memref<32x128xf32, #tpu.memory_space<vmem>>, %arg3: memref<128x128xf32, #tpu.memory_space<vmem>>, %arg4: memref<128x128xf32, #tpu.memory_space<vmem>>, %arg5: memref<8x128xf32, #tpu.memory_space<vmem>>, %arg6: memref<8x128xf32, #tpu.memory_space<vmem>>, %arg7: memref<8x128xf32, #tpu.memory_space<vmem>>) attributes {dimension_semantics = [#tpu.dimension_semantics<parallel>], iteration_bounds = array<i64: 1>, scalar_prefetch = 0 : i64, scratch_operands = 0 : i64, tpu.core_type = #tpu.core_type<tc>, window_params = [{transform_indices = @transform_0, window_bounds = array<i64: 8, 32>}, {pipeline_mode = #tpu.pipeline_mode<synchronous>, transform_indices = @transform_1, window_bounds = array<i64: 32, 128>}, {pipeline_mode = #tpu.pipeline_mode<synchronous>, transform_indices = @transform_2, window_bounds = array<i64: 128, 128>}, {pipeline_mode = #tpu.pipeline_mode<synchronous>, transform_indices = @transform_3, window_bounds = array<i64: 128, 128>}, {pipeline_mode = #tpu.pipeline_mode<synchronous>, transform_indices = @transform_4, window_bounds = array<i64: 8, 128>}, {pipeline_mode = #tpu.pipeline_mode<synchronous>, transform_indices = @transform_5, window_bounds = array<i64: 8, 128>}, {transform_indices = @transform_6, window_bounds = array<i64: 8, 128>}]} {
    %c0 = arith.constant 0 : index
    %c0_0 = arith.constant 0 : index
    %0 = vector.load %arg5[%c0, %c0_0] : memref<8x128xf32, #tpu.memory_space<vmem>>, vector<1x128xf32>
    %c1 = arith.constant 1 : index
    %c0_1 = arith.constant 0 : index
    %1 = vector.load %arg5[%c1, %c0_1] : memref<8x128xf32, #tpu.memory_space<vmem>>, vector<1x128xf32>
    %c0_2 = arith.constant 0 : index
    %c0_3 = arith.constant 0 : index
    %2 = vector.load %arg6[%c0_2, %c0_3] : memref<8x128xf32, #tpu.memory_space<vmem>>, vector<1x128xf32>
    %c1_4 = arith.constant 1 : index
    %c0_5 = arith.constant 0 : index
    %3 = vector.load %arg6[%c1_4, %c0_5] : memref<8x128xf32, #tpu.memory_space<vmem>>, vector<1x128xf32>
    %c2 = arith.constant 2 : index
    %c0_6 = arith.constant 0 : index
    %4 = vector.load %arg6[%c2, %c0_6] : memref<8x128xf32, #tpu.memory_space<vmem>>, vector<1x128xf32>
    %c0_7 = arith.constant 0 : index
    %c0_8 = arith.constant 0 : index
    %5 = vector.load %arg1[%c0_7, %c0_8] : memref<8x32xf32, #tpu.memory_space<vmem>>, vector<8x32xf32>
    %c0_9 = arith.constant 0 : index
    %c0_10 = arith.constant 0 : index
    %6 = vector.load %arg2[%c0_9, %c0_10] : memref<32x128xf32, #tpu.memory_space<vmem>>, vector<32x128xf32>
    %cst = arith.constant dense<0.000000e+00> : vector<8x128xf32>
    %7 = tpu.matmul %5, %6, %cst {dimension_numbers = #tpu.dot_dimension_numbers<[1], [0], [0], [1], [0, 0, 1, 1], [], []>} : vector<8x32xf32>, vector<32x128xf32>, vector<8x128xf32> -> vector<8x128xf32>
    %8 = vector.broadcast %0 : vector<1x128xf32> to vector<8x128xf32>
    %9 = arith.addf %7, %8 : vector<8x128xf32>
    %cst_11 = arith.constant 0.000000e+00 : f32
    %10 = vector.broadcast %cst_11 : f32 to vector<8x128xf32>
    %11 = arith.maximumf %9, %10 : vector<8x128xf32>
    %c0_12 = arith.constant 0 : index
    %c0_13 = arith.constant 0 : index
    %12 = vector.load %arg3[%c0_12, %c0_13] : memref<128x128xf32, #tpu.memory_space<vmem>>, vector<128x128xf32>
    %cst_14 = arith.constant dense<0.000000e+00> : vector<8x128xf32>
    %13 = tpu.matmul %11, %12, %cst_14 {dimension_numbers = #tpu.dot_dimension_numbers<[1], [0], [0], [1], [0, 0, 1, 1], [], []>} : vector<8x128xf32>, vector<128x128xf32>, vector<8x128xf32> -> vector<8x128xf32>
    %14 = vector.broadcast %1 : vector<1x128xf32> to vector<8x128xf32>
    %15 = arith.addf %13, %14 : vector<8x128xf32>
    %cst_15 = arith.constant 0.000000e+00 : f32
    %16 = vector.broadcast %cst_15 : f32 to vector<8x128xf32>
    %17 = arith.maximumf %15, %16 : vector<8x128xf32>
    %c0_16 = arith.constant 0 : index
    %c0_17 = arith.constant 0 : index
    %18 = vector.load %arg4[%c0_16, %c0_17] : memref<128x128xf32, #tpu.memory_space<vmem>>, vector<128x128xf32>
    %cst_18 = arith.constant dense<0.000000e+00> : vector<8x128xf32>
    %19 = tpu.matmul %17, %18, %cst_18 {dimension_numbers = #tpu.dot_dimension_numbers<[1], [0], [0], [1], [0, 0, 1, 1], [], []>} : vector<8x128xf32>, vector<128x128xf32>, vector<8x128xf32> -> vector<8x128xf32>
    %20 = vector.broadcast %2 : vector<1x128xf32> to vector<8x128xf32>
    %21 = arith.addf %19, %20 : vector<8x128xf32>
    %22 = math.tanh %21 : vector<8x128xf32>
    %23 = vector.broadcast %3 : vector<1x128xf32> to vector<8x128xf32>
    %24 = arith.mulf %22, %23 : vector<8x128xf32>
    %25 = vector.broadcast %4 : vector<1x128xf32> to vector<8x128xf32>
    %26 = arith.addf %24, %25 : vector<8x128xf32>
    %c0_19 = arith.constant 0 : index
    %c0_20 = arith.constant 0 : index
    %27 = vector.load %arg7[%c0_19, %c0_20] : memref<8x128xf32, #tpu.memory_space<vmem>>, vector<8x128xf32>
    tpu.vector_store %arg7[%c0_19, %c0_20], %26 {strides = array<i32>} : memref<8x128xf32, #tpu.memory_space<vmem>>, vector<8x128xf32>,
    return
  }
  func.func @transform_0(%arg0: i32) -> (i32, i32) {
    %c0_i32 = arith.constant 0 : i32
    %c0_i32_0 = arith.constant 0 : i32
    return %arg0, %c0_i32 : i32, i32
  }
  func.func @transform_1(%arg0: i32) -> (i32, i32) {
    %c0_i32 = arith.constant 0 : i32
    %c0_i32_0 = arith.constant 0 : i32
    %c0_i32_1 = arith.constant 0 : i32
    return %c0_i32, %c0_i32_0 : i32, i32
  }
  func.func @transform_2(%arg0: i32) -> (i32, i32) {
    %c0_i32 = arith.constant 0 : i32
    %c0_i32_0 = arith.constant 0 : i32
    %c0_i32_1 = arith.constant 0 : i32
    return %c0_i32, %c0_i32_0 : i32, i32
  }
  func.func @transform_3(%arg0: i32) -> (i32, i32) {
    %c0_i32 = arith.constant 0 : i32
    %c0_i32_0 = arith.constant 0 : i32
    %c0_i32_1 = arith.constant 0 : i32
    return %c0_i32, %c0_i32_0 : i32, i32
  }
  func.func @transform_4(%arg0: i32) -> (i32, i32) {
    %c0_i32 = arith.constant 0 : i32
    %c0_i32_0 = arith.constant 0 : i32
    %c0_i32_1 = arith.constant 0 : i32
    return %c0_i32, %c0_i32_0 : i32, i32
  }
  func.func @transform_5(%arg0: i32) -> (i32, i32) {
    %c0_i32 = arith.constant 0 : i32
    %c0_i32_0 = arith.constant 0 : i32
    %c0_i32_1 = arith.constant 0 : i32
    return %c0_i32, %c0_i32_0 : i32, i32
  }
  func.func @transform_6(%arg0: i32) -> (i32, i32) {
    %c0_i32 = arith.constant 0 : i32
    %c0_i32_0 = arith.constant 0 : i32
    return %arg0, %c0_i32 : i32, i32
  }
}

</mosaic_0001>

<bundles_post_ra>
// kernel: fwd.1
= control target key start
LH: loop header
LB: loop body
LE: loop exit
PB: predicated region body
PF: predicated region fallthrough
CT: control target
= control target key end

     0   :  { %11 = vsyncpa [#allocation3], 0  ;;  %s877_s0 = inlined_call_operand.hbm [shape: f32[8,32], index: 0, kind: input, shape index: {}]   ;;  %s878_s1 = inlined_call_operand.hbm [shape: f32[32,128], index: 1, kind: input, shape index: {}]   ;;  %s879_s2 = inlined_call_operand.hbm [shape: f32[128,128], index: 2, kind: input, shape index: {}]   ;;  %s880_s3 = inlined_call_operand.hbm [shape: f32[128,128], index: 3, kind: input, shape index: {}]   ;;  %s881_s4 = inlined_call_operand.hbm [shape: f32[8,128], index: 4, kind: input, shape index: {}]   ;;  %s882_s5 = inlined_call_operand.vmem [shape: f32[8,128], index: 5, kind: input, shape index: {}]   ;;  %s883_s6 = inlined_call_operand.hbm [shape: f32[8,128], index: 6, kind: output, shape index: {}]  }
   0x1   :  { %12 = vsyncpa [#allocation6], 0 }
   0x2   :  { %13 = vsyncpa [#allocation9], 0 }
   0x3   :  { %14 = vsyncpa [#allocation4], 0  ;;  %s720_s21 = smov [#allocation5]   ;;  %s580_s25 = scalar_lea.hbm %s878_s1, 512 }
   0x4   :  { %s30_s22 = sshll.u32 %s720_s21, 4  ;;  %p581_p0 = scmp.ne.s32.totalorder %s878_s1, %s580_s25  ;;  %s31_s22 = int_to_ptr.vmem [resolvable:$true] %s30_s22 }
   0x5   :  { %p584_p1 = scmp.lt.u32.totalorder %s580_s25, %s878_s1 }
   0x7   :  { %p586_p2 = pnand %p584_p1, %p581_p0 }
   0x9   :  { %589 = shalt.err (!%p586_p2)
}
   0xa   :  { %s590_s30 = scalar_lea.vmem %s31_s22, 512  ;;  %p595_p4 = scmp.lt.s32.totalorder %s31_s22, %s31_s22 }
   0xb   :  { %p591_p3 = scmp.ne.s32.totalorder %s31_s22, %s590_s30  ;;  %p596_p5 = scmp.lt.s32.totalorder %s590_s30, %s590_s30 }
   0xd   :  { %p597_p6 = por %p596_p5, %p595_p4 }
   0xf   :  { %p598_p7 = pnand %p597_p6, %p591_p3 }
  0x11   :  { %601 = shalt.err (!%p598_p7)
}
  0x12   :  { %s721_s7 = smov 128   ;;  %s722_s8 = smov 8  }
  0x13   :  { %36 = dma.hbm_to_vmem [thread:$0]  %s878_s1, 512, %s31_s22, [#allocation6], %s721_s7, %s721_s7, %s722_s8  }
  0x14   :  { %s723_s11 = smov [#allocation8]   ;;  %s724_s13 = smov [#allocation2]  }
  0x15   :  { %s54_s12 = sshll.u32 %s723_s11, 4  ;;  %s21_s14 = sshll.u32 %s724_s13, 4  ;;  %s55_s12 = int_to_ptr.vmem [resolvable:$true] %s54_s12  ;;  %s22_s14 = int_to_ptr.vmem [resolvable:$true] %s21_s14 }
  0x16   :  { %s602_s17 = scalar_lea.hbm %s880_s3, 2048 }
  0x17   :  { %p603_p8 = scmp.ne.s32.totalorder %s880_s3, %s602_s17  ;;  %p606_p9 = scmp.lt.u32.totalorder %s602_s17, %s880_s3 }
  0x19   :  { %p608_p10 = pnand %p606_p9, %p603_p8 }
  0x1b   :  { %611 = shalt.err (!%p608_p10)
}
  0x1c   :  { %s612_s1 = scalar_lea.vmem %s55_s12, 2048  ;;  %p617_p12 = scmp.lt.s32.totalorder %s55_s12, %s55_s12 }
  0x1d   :  { %p613_p11 = scmp.ne.s32.totalorder %s55_s12, %s612_s1  ;;  %p618_p13 = scmp.lt.s32.totalorder %s612_s1, %s612_s1 }
  0x1f   :  { %p619_p0 = por %p618_p13, %p617_p12 }
  0x21   :  { %p620_p1 = pnand %p619_p0, %p613_p11 }
  0x23   :  { %623 = shalt.err (!%p620_p1)
}
  0x24   :  { %60 = dma.hbm_to_vmem [thread:$0]  %s880_s3, 2048, %s55_s12, [#allocation9], %s721_s7, %s721_s7, %s722_s8  }
  0x25   :  { %s624_s26 = scalar_lea.hbm %s877_s0, 128 }
  0x26   :  { %p625_p2 = scmp.ne.s32.totalorder %s877_s0, %s624_s26  ;;  %p628_p3 = scmp.lt.u32.totalorder %s624_s26, %s877_s0 }
  0x28   :  { %p630_p4 = pnand %p628_p3, %p625_p2 }
  0x2a   :  { %633 = shalt.err (!%p630_p4)
}
  0x2b   :  { %s634_s9 = scalar_lea.vmem %s22_s14, 128  ;;  %p639_p6 = scmp.lt.s32.totalorder %s22_s14, %s22_s14 }
  0x2c   :  { %p635_p5 = scmp.ne.s32.totalorder %s22_s14, %s634_s9  ;;  %p640_p7 = scmp.lt.s32.totalorder %s634_s9, %s634_s9 }
  0x2e   :  { %p641_p8 = por %p640_p7, %p639_p6 }
  0x30   :  { %p642_p9 = pnand %p641_p8, %p635_p5 }
  0x32   :  { %645 = shalt.err (!%p642_p9)
}
  0x33   :  { %24 = dma.hbm_to_vmem [thread:$0]  %s877_s0, 128, %s22_s14, [#allocation3]  }
  0x34   :  { %s725_s11 = smov [#allocation7]   ;;  %s726_s13 = smov [#allocation10]  }
  0x35   :  { %s42_s12 = sshll.u32 %s725_s11, 4  ;;  %s67_s15 = sshll.u32 %s726_s13, 4  ;;  %s43_s12 = int_to_ptr.vmem [resolvable:$true] %s42_s12  ;;  %s68_s15 = int_to_ptr.vmem [resolvable:$true] %s67_s15 }
  0x36   :  { %s646_s18 = scalar_lea.hbm %s879_s2, 2048 }
  0x37   :  { %p647_p10 = scmp.ne.s32.totalorder %s879_s2, %s646_s18  ;;  %p650_p11 = scmp.lt.u32.totalorder %s646_s18, %s879_s2 }
  0x39   :  { %p652_p12 = pnand %p650_p11, %p647_p10 }
  0x3b   :  { %655 = shalt.err (!%p652_p12)
}
  0x3c   :  { %s656_s0 = scalar_lea.vmem %s43_s12, 2048  ;;  %p661_p0 = scmp.lt.s32.totalorder %s43_s12, %s43_s12 }
  0x3d   :  { %p657_p13 = scmp.ne.s32.totalorder %s43_s12, %s656_s0  ;;  %p662_p1 = scmp.lt.s32.totalorder %s656_s0, %s656_s0 }
  0x3f   :  { %p663_p2 = por %p662_p1, %p661_p0 }
  0x41   :  { %p664_p3 = pnand %p663_p2, %p657_p13 }
  0x43   :  { %667 = shalt.err (!%p664_p3)
}
  0x44   :  { %48 = dma.hbm_to_vmem [thread:$0]  %s879_s2, 2048, %s43_s12, [#allocation6], %s721_s7, %s721_s7, %s722_s8  }
  0x45   :  { %s668_s25 = scalar_lea.hbm %s881_s4, 128 }
  0x46   :  { %p669_p4 = scmp.ne.s32.totalorder %s881_s4, %s668_s25  ;;  %p672_p5 = scmp.lt.u32.totalorder %s668_s25, %s881_s4 }
  0x48   :  { %p674_p6 = pnand %p672_p5, %p669_p4 }
  0x4a   :  { %677 = shalt.err (!%p674_p6)
}
  0x4b   :  { %s678_s30 = scalar_lea.vmem %s68_s15, 128  ;;  %p683_p8 = scmp.lt.s32.totalorder %s68_s15, %s68_s15 }
  0x4c   :  { %p679_p7 = scmp.ne.s32.totalorder %s68_s15, %s678_s30  ;;  %p684_p9 = scmp.lt.s32.totalorder %s678_s30, %s678_s30 }
  0x4e   :  { %p685_p10 = por %p684_p9, %p683_p8 }
  0x50   :  { %p686_p11 = pnand %p685_p10, %p679_p7 }
  0x52   :  { %689 = shalt.err (!%p686_p11)
}
  0x53   :  { %70 = dma.hbm_to_vmem [thread:$0]  %s881_s4, 128, %s68_s15, [#allocation9]  }
  0x54   :  { %712 = dma.done.wait [#allocation3], 128  }
  0x55   :  { %713 = vsyncadd [#allocation3], 4294967168 }
  0x56   :  { %714 = dma.done.wait [#allocation6], 2560  }
  0x57   :  { %715 = vsyncadd [#allocation6], 4294964736 }
  0x58   :  { %716 = dma.done.wait [#allocation9], 2176  }
  0x59   :  { %717 = vsyncadd [#allocation9], 4294965120  ;;  %v727_v0 = vmov 0.0|0.0   ;;  %vm728_vm0 = vmmov 0   ;;  %v729_v1 = vmov 0.0   ;;  %v94_v2 = vld [vmem:[#allocation5] sm:$0xff] }
  0x5a   :  { %513 = vmatprep.subr.bf16.mxu0 %v727_v0  ;;  %440 = vmatprep.mubr.msk.f32.mxu0 %vm728_vm0, %v729_v1  ;;  %v95_v3 = vld [vmem:[#allocation5 + $0x8] sm:$0xff]  ;;  %v96_v4 = vld [vmem:[#allocation5 + $0x10] sm:$0xff]  ;;  %v97_v6 = vld [vmem:[#allocation5 + $0x18] sm:$0xff]  ;;  %vm102_vm1 = vcmask 261120   ;;  %s730_s12 = smov [#allocation11]  }
  0x5b   :  { %519 = vmatprep.subr.bf16.mxu1 %v727_v0  ;;  %475 = vmatprep.mubr.msk.f32.mxu1 %vm728_vm0, %v729_v1  ;;  %v514_v5 = vpack.c.bf16 %v95_v3, %v94_v2  ;;  %v177_v7 = vld [vmem:[#allocation7] sm:$0xff]  ;;  %v178_v8 = vld [vmem:[#allocation7 + $0x8] sm:$0xff]  ;;  %v179_v9 = vld [vmem:[#allocation7 + $0x10] sm:$0xff]  ;;  %v517_v11 = vpack.c.bf16 %v97_v6, %v96_v4  ;;  %s376_s13 = sshll.u32 %s730_s12, 4  ;;  %s377_s13 = int_to_ptr.vmem [resolvable:$true] %s376_s13 }
  0x5c   :  { %v180_v10 = vld [vmem:[#allocation7 + $0x18] sm:$0xff]  ;;  %v520_v12 = vpack.c.bf16 %v178_v8, %v177_v7  ;;  %v181_v14 = vld [vmem:[#allocation7 + $0x20] sm:$0xff]  ;;  %v182_v15 = vld [vmem:[#allocation7 + $0x28] sm:$0xff]  ;;  %s690_s15 = scalar_lea.vmem %s377_s13, 128  ;;  %p695_p13 = scmp.lt.s32.totalorder %s377_s13, %s377_s13 }
  0x5d   :  { %515 = vmatpush3.bf16.msra.mxu0 %v514_v5  ;;  %v523_v13 = vpack.c.bf16 %v180_v10, %v179_v9  ;;  %v93_v16 = vld [vmem:[#allocation2] sm:$0xff]  ;;  %v526_v17 = vpack.c.bf16 %v182_v15, %v181_v14  ;;  %v183_v18 = vld [vmem:[#allocation7 + $0x30] sm:$0xff]  ;;  %v185_v21 = vld [vmem:[#allocation7 + $0x40] sm:$0xff]  ;;  %p691_p12 = scmp.ne.s32.totalorder %s377_s13, %s690_s15  ;;  %p696_p0 = scmp.lt.s32.totalorder %s690_s15, %s690_s15 }
  0x5e   :  { %516 = vmatprep.subr.bf16.mxu0 %v727_v0  ;;  %521 = vmatpush3.bf16.msra.mxu1 %v520_v12  ;;  %v184_v19 = vld [vmem:[#allocation7 + $0x38] sm:$0xff]  ;;  %v186_v22 = vld [vmem:[#allocation7 + $0x48] sm:$0xff]  ;;  %v187_v24 = vld [vmem:[#allocation7 + $0x50] sm:$0xff] }
  0x5f   :  { %522 = vmatprep.subr.bf16.mxu1 %v727_v0  ;;  %v529_v20 = vpack.c.bf16 %v184_v19, %v183_v18  ;;  %v532_v23 = vpack.c.bf16 %v186_v22, %v185_v21  ;;  %v188_v25 = vld [vmem:[#allocation7 + $0x58] sm:$0xff]  ;;  %v189_v27 = vld [vmem:[#allocation7 + $0x60] sm:$0xff]  ;;  %v190_v28 = vld [vmem:[#allocation7 + $0x68] sm:$0xff]  ;;  %p697_p1 = por %p696_p0, %p695_p13 }
  0x60   :  { %v535_v26 = vpack.c.bf16 %v188_v25, %v187_v24  ;;  %v538_v29 = vpack.c.bf16 %v190_v28, %v189_v27  ;;  %v191_v30 = vld [vmem:[#allocation7 + $0x70] sm:$0xff]  ;;  %v192_v31 = vld [vmem:[#allocation7 + $0x78] sm:$0xff]  ;;  %v268_v33 = vld [vmem:[#allocation8] sm:$0xff] }
  0x61   :  { %518 = vmatpush3.bf16.msra.mxu0 %v517_v11  ;;  %v541_v32 = vpack.c.bf16 %v192_v31, %v191_v30  ;;  %v269_v34 = vld [vmem:[#allocation8 + $0x8] sm:$0xff]  ;;  %v270_v35 = vld [vmem:[#allocation8 + $0x10] sm:$0xff]  ;;  %v271_v37 = vld [vmem:[#allocation8 + $0x18] sm:$0xff]  ;;  %p698_p2 = pnand %p697_p1, %p691_p12 }
  0x62   :  { %543 = vmatprep.subr.bf16.mxu0 %v727_v0  ;;  %524 = vmatpush3.bf16.msra.mxu1 %v523_v13  ;;  %v544_v36 = vpack.c.bf16 %v269_v34, %v268_v33  ;;  %v547_v38 = vpack.c.bf16 %v271_v37, %v270_v35  ;;  %v272_v39 = vld [vmem:[#allocation8 + $0x20] sm:$0xff]  ;;  %v273_v40 = vld [vmem:[#allocation8 + $0x28] sm:$0xff]  ;;  %v274_v42 = vld [vmem:[#allocation8 + $0x30] sm:$0xff] }
  0x63   :  { %525 = vmatprep.subr.bf16.mxu1 %v727_v0  ;;  %v550_v41 = vpack.c.bf16 %v273_v40, %v272_v39  ;;  %v275_v43 = vld [vmem:[#allocation8 + $0x38] sm:$0xff]  ;;  %v276_v45 = vld [vmem:[#allocation8 + $0x40] sm:$0xff]  ;;  %v277_v46 = vld [vmem:[#allocation8 + $0x48] sm:$0xff] }
  0x64   :  { %441 = vmatmul.mubr.msk.f32.vlgmr.msra.gmra.mrb[0].mxu0 %vm102_vm1, %v93_v16  ;;  %v553_v44 = vpack.c.bf16 %v275_v43, %v274_v42  ;;  %v556_v47 = vpack.c.bf16 %v277_v46, %v276_v45  ;;  %v278_v48 = vld [vmem:[#allocation8 + $0x50] sm:$0xff]  ;;  %v279_v49 = vld [vmem:[#allocation8 + $0x58] sm:$0xff]  ;;  %v280_v51 = vld [vmem:[#allocation8 + $0x60] sm:$0xff] }
  0x65   :  { %510 = vmatprep.mubr.msk.f32.mxu0 %vm728_vm0, %v729_v1  ;;  %545 = vmatpush3.bf16.msra.mxu0 %v544_v36  ;;  %v559_v50 = vpack.c.bf16 %v279_v49, %v278_v48  ;;  %v281_v52 = vld [vmem:[#allocation8 + $0x68] sm:$0xff]  ;;  %v387_v54 = vld [vmem:[#allocation10] ss:$0 sm:$0xff]  ;;  %v282_v59 = vld [vmem:[#allocation8 + $0x70] sm:$0xff] }
  0x66   :  { %527 = vmatpush3.bf16.msra.mxu1 %v526_v17  ;;  %546 = vmatprep.subr.bf16.mxu0 %v727_v0  ;;  %v562_v53 = vpack.c.bf16 %v281_v52, %v280_v51  ;;  %v283_v60 = vld [vmem:[#allocation8 + $0x78] sm:$0xff]  ;;  %v389_v62 = vld [vmem:[#allocation10 + $0x1] ss:$0 sm:$0xff] }
  0x67   :  { %528 = vmatprep.subr.bf16.mxu1 %v727_v0  ;;  %v565_v61 = vpack.c.bf16 %v283_v60, %v282_v59  ;;  %v391_v7 = vld [vmem:[%s882_s5 + $0x1] ss:$0 sm:$0xff]  ;;  %v392_v9 = vld [vmem:[%s882_s5 + $0x2] ss:$0 sm:$0xff] }
  0x69   :  { %548 = vmatpush3.bf16.msra.mxu0 %v547_v38 }
  0x6a   :  { %530 = vmatpush3.bf16.msra.mxu1 %v529_v20  ;;  %549 = vmatprep.subr.bf16.mxu0 %v727_v0 }
  0x6b   :  { %531 = vmatprep.subr.bf16.mxu1 %v727_v0 }
  0x6d   :  { %551 = vmatpush3.bf16.msra.mxu0 %v550_v41 }
  0x6e   :  { %533 = vmatpush3.bf16.msra.mxu1 %v532_v23  ;;  %552 = vmatprep.subr.bf16.mxu0 %v727_v0 }
  0x6f   :  { %534 = vmatprep.subr.bf16.mxu1 %v727_v0 }
  0x71   :  { %554 = vmatpush3.bf16.msra.mxu0 %v553_v44 }
  0x72   :  { %536 = vmatpush3.bf16.msra.mxu1 %v535_v26  ;;  %555 = vmatprep.subr.bf16.mxu0 %v727_v0 }
  0x73   :  { %537 = vmatprep.subr.bf16.mxu1 %v727_v0 }
  0x75   :  { %557 = vmatpush3.bf16.msra.mxu0 %v556_v47 }
  0x76   :  { %539 = vmatpush3.bf16.msra.mxu1 %v538_v29  ;;  %558 = vmatprep.subr.bf16.mxu0 %v727_v0 }
  0x77   :  { %540 = vmatprep.subr.bf16.mxu1 %v727_v0 }
  0x79   :  { %560 = vmatpush3.bf16.msra.mxu0 %v559_v50 }
  0x7a   :  { %542 = vmatpush3.bf16.msra.mxu1 %v541_v32  ;;  %561 = vmatprep.subr.bf16.mxu0 %v727_v0 }
  0x7d   :  { %563 = vmatpush3.bf16.msra.mxu0 %v562_v53 }
  0x7e   :  { %564 = vmatprep.subr.bf16.mxu0 %v727_v0  ;;  %v390_v0 = vld [vmem:[%s882_s5] ss:$0 sm:$0xff] }
  0x81   :  { %566 = vmatpush3.bf16.msra.mxu0 %v565_v61 }
 0x137   :  { %v172_v55 = vpop.f32.mrb[0].mxu0 }
 0x138   :  { %v173_v56 = vadd.f32 %v387_v54, %v172_v55  ;;  %v442_v57 = vpop.f32.mrb[1].mxu0 }
 0x13a   :  { %v176_v58 = vmax.f32 %v173_v56, 0.0 }
 0x13c   :  { %476 = vmatmul.mubr.f32.vlgmr.msra.gmra.mrb[0].mxu1 %v176_v58 }
 0x20f   :  { %v263_v63 = vpop.f32.mrb[0].mxu1 }
 0x210   :  { %v264_v1 = vadd.f32 %v389_v62, %v263_v63  ;;  %v477_v2 = vpop.f32.mrb[1].mxu1 }
 0x212   :  { %v267_v3 = vmax.f32 %v264_v1, 0.0 }
 0x214   :  { %511 = vmatmul.mubr.f32.vlgmr.msra.gmra.mrb[2].mxu0 %v267_v3 }
 0x2e7   :  { %v354_v4 = vpop.f32.mrb[2].mxu0 }
 0x2e8   :  { %v355_v5 = vadd.f32 %v390_v0, %v354_v4  ;;  %v512_v6 = vpop.f32.mrb[3].mxu0 }
 0x2ea   :  { %578 = vtanh.f32 %v355_v5 }
 0x2f4   :  { %v579_v8 = vpop.eup %578 }
 0x2f5   :  { %v363_v10 = vmul.f32 %v579_v8, %v391_v7 }
 0x2f7   :  { %v368_v11 = vadd.f32 %v392_v9, %v363_v10 }
 0x2f9   :  { %369 = vst [vmem:[#allocation11] sm:$0xff] %v368_v11 }
 0x2fa   :  { %701 = shalt.err (!%p698_p2)
}
 0x2fb   :  { %s702_s18 = scalar_lea.hbm %s883_s6, 128 }
 0x2fc   :  { %p703_p3 = scmp.ne.s32.totalorder %s883_s6, %s702_s18  ;;  %p706_p4 = scmp.lt.u32.totalorder %s702_s18, %s883_s6 }
 0x2fe   :  { %p708_p5 = pnand %p706_p4, %p703_p3 }
 0x300   :  { %711 = shalt.err (!%p708_p5)
}
 0x301   :  { %379 = dma.vmem_to_hbm [thread:$0]  %s377_s13, 128, %s883_s6, [#allocation4]  }
 0x302   :  { %718 = dma.done.wait [#allocation4], 128  }
 0x303   :  { %719 = vsyncadd [#allocation4], 4294967168 }
 0x304   :  { %383 = vsyncpa [#allocation3], 1 }
 0x305   :  { %384 = vsyncpa [#allocation6], 1 }
 0x306   :  { %385 = vsyncpa [#allocation9], 1 }
 0x307   :  { %386 = vsyncpa [#allocation4], 1 }

</bundles_post_ra>
